<compile_context>
chip_gen: v7x
topology: tpu7x:2x2x1
jax: 0.10.0
libtpu: 0.0.40
codegen_flags: <defaults>
</compile_context>

<pallas_src>
import functools
import math

import jax
import jax.numpy as jnp
from jax.experimental import pallas as pl
from jax.experimental.pallas import tpu as pltpu


# ---------------------------------------------------------------------------
# Kernel
# ---------------------------------------------------------------------------
def se_block_kernel(x_ref, m_ref, w1t_ref, w2_ref, b1_ref, b2_ref, o_ref, *,
                    inv_hw, total_rows):
    """Fused SE forward for one block of Rblk rows (one row = one (b, c) pair).

    x_ref  : (Rblk, HW)    input rows (spatial on lanes)
    m_ref  : (Rblk, Rblk)  block-diagonal 0/1 matrix; M[r, r'] = 1 iff rows
                           r, r' belong to the same batch element
    w1t_ref: (Rblk, NL)    row-expanded fc1 weight, row r = w1[:, r % C]
    w2_ref : (Rblk, NL)    row-expanded fc2 weight, row r = w2[r % C, :]
    b1_ref : (1, NL)       fc1 bias
    b2_ref : (Rblk, 1)     row-expanded fc2 bias, row r = b2[r % C]
    o_ref  : (Rblk, HW)
    """
    rblk = x_ref.shape[0]
    x = x_ref[...]

    # --- squeeze: per-row spatial mean (lane reduction, f32 accumulation).
    # Lanes past HW never exist here (block last dim == full HW), so the mean
    # over the true H*W is exact.
    pooled = jnp.sum(x, axis=-1, keepdims=True, dtype=jnp.float32) * inv_hw

    # Rows past the real array (possible only in a partial last block) hold
    # unspecified data; zero them so NaN/Inf cannot leak into the group-sum
    # below (0 * NaN == NaN).  Their outputs are dropped by Pallas anyway.
    row0 = pl.program_id(0) * rblk
    rid = jax.lax.broadcasted_iota(jnp.int32, (rblk, 1), 0) + row0
    pooled = jnp.where(rid < total_rows, pooled, 0.0)

    # --- excitation, batched over all rows of the block ---
    # fc1: h[b, j] = sum_c pooled[b, c] * w1[j, c] + b1[j].
    # In row layout A[r, j] = pooled[r] * w1[j, c(r)]; summing A over the rows
    # of each batch group is one tiny block-diagonal matmul (MXU, off the
    # HBM-bound critical path and overlapped with the next block's DMA).
    a = pooled * w1t_ref[...]                                          # (Rblk, NL)
    h = jnp.dot(m_ref[...], a, preferred_element_type=jnp.float32)     # (Rblk, NL)
    h = jnp.maximum(h + b1_ref[...], 0.0)
    # fc2 + sigmoid, per row: g[r] = sigmoid(sum_j h[r, j] * w2[c(r), j] + b2[c(r)])
    pre = jnp.sum(h * w2_ref[...], axis=-1, keepdims=True) + b2_ref[...]  # (Rblk, 1)
    gate = jax.nn.sigmoid(pre)                                            # EUP

    # --- scale: multiply in the input dtype (no f32 copy of the x block) ---
    o_ref[...] = x * gate.astype(x.dtype)


# ---------------------------------------------------------------------------
# Sizing helpers (generation-aware)
# ---------------------------------------------------------------------------
def _vmem_limit_bytes():
    """~75% of physical VMEM: 128 MiB on v5e/v6e, 64 MiB per TensorCore on
    v7x.  Falls back to the smallest (v7x) figure if the query fails."""
    cap = 64 << 20
    try:
        info = pltpu.get_tpu_info()
        cap = int(getattr(info, "vmem_capacity_bytes", cap)) or cap
    except Exception:
        pass
    return max(32 << 20, min((cap * 3) // 4, 100 << 20))


def _pick_rblk(rows, c, nl, row_bytes, vmem_budget, target_block_bytes, rblk_cap):
    """Rows per grid step.  Rblk must be a multiple of lcm(8, C) (sublane rule
    + whole batch elements per block) unless it equals the full row count."""
    row_unit = (8 * c) // math.gcd(8, c)

    def vmem_ok(r):
        x_bufs = 4 * r * row_bytes                      # 2x double-buffered in + out
        consts = 2 * (r * r * 4 + 2 * r * nl * 4 + r * 4)   # M + row-tiled weights
        return x_bufs + consts + (1 << 20) <= vmem_budget

    if rows <= row_unit:
        rblk = rows                                     # single full-extent block
    else:
        rblk = row_unit
        while True:
            if rblk * row_bytes >= target_block_bytes:
                break
            nxt = rblk + row_unit
            if nxt > min(rows, rblk_cap) or not vmem_ok(nxt):
                break
            rblk = nxt
        # Prefer >= 4 grid steps when the problem is big enough: the parallel
        # batch-row axis shards across v7x's 2 TensorCores, so >= 4 steps gives
        # each core >= 2 balanced, double-buffered steps; on v5e/v6e it lets
        # the pipeline reach steady state.  Never shrink below one row_unit.
        for steps in (4, 2):
            cap_for_steps = (rows // steps) // row_unit * row_unit
            if cap_for_steps >= row_unit:
                rblk = min(rblk, cap_for_steps)
                break

    if not vmem_ok(rblk):
        # TODO(synk): two-phase fallback (pool pass over HW tiles, then scale
        # pass) for shapes whose minimum single-pass block exceeds VMEM — hits
        # v7x's 64 MiB first.  Not needed for the shapes exercised here.
        raise NotImplementedError(
            "SEBlock row tile does not fit in VMEM; two-phase fallback needed")
    return rblk


# ---------------------------------------------------------------------------
# Wrapper
# ---------------------------------------------------------------------------
def se_block(x_nchw, w1, b1, w2, b2):
    """SEBlock forward. x_nchw: (B, C, H, W). w1: (NL, C), b1: (NL,),
    w2: (C, NL), b2: (C,)  (the 1x1 conv weights collapsed to matrices).

    Note: for the in-place alias (input_output_aliases={0: 0}) to avoid an
    extra HBM copy, callers should donate x, e.g.
    jax.jit(se_block, donate_argnums=0)."""
    B, C, H, W = x_nchw.shape
    NL = w1.shape[0]
    HW = H * W
    rows = B * C
    itemsize = jnp.dtype(x_nchw.dtype).itemsize

    # Free, row-major-contiguous reshape: (B, C, H, W) -> (B*C, HW).
    x_flat = x_nchw.reshape(rows, HW)

    # VMEM footprint of one row of a block (lanes pad to a multiple of 128
    # inside VMEM even though no HBM padding is done).
    lane_p = ((HW + 127) // 128) * 128
    row_bytes = lane_p * itemsize

    vmem_limit = _vmem_limit_bytes()
    vmem_budget = vmem_limit - (8 << 20)                 # headroom for Mosaic scratch
    target_block_bytes = max(4 << 20, min(16 << 20, vmem_budget // 6))
    # TODO(synk): the Rblk cap bounds the (Rblk, Rblk) group-sum matrix; for
    # tiny-HW / huge-batch shapes a roll-based group sum would allow bigger blocks.
    rblk = _pick_rblk(rows, C, NL, row_bytes, vmem_budget,
                      target_block_bytes, rblk_cap=1024)
    grid = (pl.cdiv(rows, rblk),)

    # Host-precomputed constants.  They repeat every C rows, so a single
    # (rblk, .) tile (constant index_map -> fetched once, stays resident)
    # serves every grid step.
    reps = rblk // C
    w1t_rows = jnp.tile(jnp.transpose(w1).astype(jnp.float32), (reps, 1))   # (rblk, NL)
    w2_rows = jnp.tile(w2.astype(jnp.float32), (reps, 1))                   # (rblk, NL)
    b2_rows = jnp.tile(b2.reshape(C, 1).astype(jnp.float32), (reps, 1))     # (rblk, 1)
    b1_row = b1.reshape(1, NL).astype(jnp.float32)
    gidx = jnp.arange(rblk, dtype=jnp.int32) // C
    m = (gidx[:, None] == gidx[None, :]).astype(jnp.float32)                # (rblk, rblk)

    kernel = functools.partial(
        se_block_kernel, inv_hw=1.0 / float(HW), total_rows=rows)

    out_flat = pl.pallas_call(
        kernel,
        out_shape=jax.ShapeDtypeStruct((rows, HW), x_flat.dtype),
        grid_spec=pltpu.PrefetchScalarGridSpec(
            num_scalar_prefetch=0,
            grid=grid,
            in_specs=[
                pl.BlockSpec((rblk, HW), lambda r: (r, 0)),      # x rows
                pl.BlockSpec((rblk, rblk), lambda r: (0, 0)),    # group-sum matrix
                pl.BlockSpec((rblk, NL), lambda r: (0, 0)),      # w1.T, row-expanded
                pl.BlockSpec((rblk, NL), lambda r: (0, 0)),      # w2, row-expanded
                pl.BlockSpec((1, NL), lambda r: (0, 0)),         # b1
                pl.BlockSpec((rblk, 1), lambda r: (0, 0)),       # b2, row-expanded
            ],
            out_specs=pl.BlockSpec((rblk, HW), lambda r: (r, 0)),
        ),
        compiler_params=pltpu.CompilerParams(
            dimension_semantics=("parallel",),
            vmem_limit_bytes=vmem_limit,
        ),
        input_output_aliases={0: 0},   # in-place scaling when x is donated
    )(x_flat, m, w1t_rows, w2_rows, b1_row, b2_rows)

    return out_flat.reshape(B, C, H, W)


def se_block_reference(x_nchw, w1, b1, w2, b2):
    """Pure-JAX reference matching the PyTorch SEBlock forward."""
    pooled = jnp.mean(x_nchw, axis=(2, 3))                 # (B, C)
    h = jnp.maximum(pooled @ w1.T + b1, 0.0)               # (B, NL)
    g = jax.nn.sigmoid(h @ w2.T + b2)                      # (B, C)
    return x_nchw * g[:, :, None, None]


if __name__ == "__main__":
    # Small shapes consistent with the module: in_dim=4 channels, num_linear=8.
    B, C, H, W = 2, 4, 16, 16
    NL = 8

    key = jax.random.PRNGKey(0)
    kx, kw1, kb1, kw2, kb2 = jax.random.split(key, 5)

    x = jax.random.normal(kx, (B, C, H, W), dtype=jnp.float32)
    # 1x1 conv weights (out, in, 1, 1) collapse to plain (out, in) matrices.
    w1 = jax.random.normal(kw1, (NL, C), dtype=jnp.float32) * 0.1
    b1 = jax.random.normal(kb1, (NL,), dtype=jnp.float32) * 0.1
    w2 = jax.random.normal(kw2, (C, NL), dtype=jnp.float32) * 0.1
    b2 = jax.random.normal(kb2, (C,), dtype=jnp.float32) * 0.1

    ref = se_block_reference(x, w1, b1, w2, b2)

    out = se_block(x, w1, b1, w2, b2)
    out = jax.block_until_ready(out)

    assert out.shape == (B, C, H, W)
    # Tolerance allows for the MXU f32 path used by the tiny group-sum matmul;
    # any structural error would be orders of magnitude larger.
    assert jnp.allclose(out, ref, atol=1e-4, rtol=1e-4), "mismatch vs reference"

    print("KERNEL_OK")
</pallas_src>

<mosaic_0001>
module attributes {stable_mosaic.version = 11 : i64} {
  func.func @se_block_kernel(%arg0: i32, %arg1: memref<8x256xf32, #tpu.memory_space<vmem>>, %arg2: memref<8x8xf32, #tpu.memory_space<vmem>>, %arg3: memref<8x8xf32, #tpu.memory_space<vmem>>, %arg4: memref<8x8xf32, #tpu.memory_space<vmem>>, %arg5: memref<1x8xf32, #tpu.memory_space<vmem>>, %arg6: memref<8x1xf32, #tpu.memory_space<vmem>>, %arg7: memref<8x256xf32, #tpu.memory_space<vmem>>) attributes {dimension_semantics = [#tpu.dimension_semantics<parallel>], iteration_bounds = array<i64: 1>, scalar_prefetch = 0 : i64, scratch_operands = 0 : i64, tpu.core_type = #tpu.core_type<tc>, window_params = [{transform_indices = @transform_0, window_bounds = array<i64: 8, 256>}, {pipeline_mode = #tpu.pipeline_mode<synchronous>, transform_indices = @transform_1, window_bounds = array<i64: 8, 8>}, {pipeline_mode = #tpu.pipeline_mode<synchronous>, transform_indices = @transform_2, window_bounds = array<i64: 8, 8>}, {pipeline_mode = #tpu.pipeline_mode<synchronous>, transform_indices = @transform_3, window_bounds = array<i64: 8, 8>}, {pipeline_mode = #tpu.pipeline_mode<synchronous>, transform_indices = @transform_4, window_bounds = array<i64: 1, 8>}, {pipeline_mode = #tpu.pipeline_mode<synchronous>, transform_indices = @transform_5, window_bounds = array<i64: 8, 1>}, {transform_indices = @transform_6, window_bounds = array<i64: 8, 256>}]} {
    %c0 = arith.constant 0 : index
    %c0_0 = arith.constant 0 : index
    %0 = vector.load %arg1[%c0, %c0_0] : memref<8x256xf32, #tpu.memory_space<vmem>>, vector<8x256xf32>
    %cst = arith.constant dense<0.000000e+00> : vector<8xf32>
    %1 = vector.multi_reduction <add>, %0, %cst [1] : vector<8x256xf32> to vector<8xf32>
    %2 = vector.shape_cast %1 : vector<8xf32> to vector<8x1xf32>
    %cst_1 = arith.constant 3.906250e-03 : f32
    %3 = vector.broadcast %cst_1 : f32 to vector<8x1xf32>
    %4 = arith.mulf %2, %3 : vector<8x1xf32>
    %c8_i32 = arith.constant 8 : i32
    %5 = arith.muli %arg0, %c8_i32 : i32
    %6 = tpu.iota {dimensions = array<i32: 0>} : vector<8x1xi32>
    %7 = vector.broadcast %5 : i32 to vector<8x1xi32>
    %8 = arith.addi %6, %7 : vector<8x1xi32>
    %c8_i32_2 = arith.constant 8 : i32
    %9 = vector.broadcast %c8_i32_2 : i32 to vector<8x1xi32>
    %10 = arith.cmpi slt, %8, %9 : vector<8x1xi32>
    %cst_3 = arith.constant 0.000000e+00 : f32
    %11 = vector.broadcast %cst_3 : f32 to vector<8x1xf32>
    %12 = arith.select %10, %4, %11 : vector<8x1xi1>, vector<8x1xf32>
    %c0_4 = arith.constant 0 : index
    %c0_5 = arith.constant 0 : index
    %13 = vector.load %arg3[%c0_4, %c0_5] : memref<8x8xf32, #tpu.memory_space<vmem>>, vector<8x8xf32>
    %14 = vector.broadcast %12 : vector<8x1xf32> to vector<8x8xf32>
    %15 = arith.mulf %14, %13 : vector<8x8xf32>
    %c0_6 = arith.constant 0 : index
    %c0_7 = arith.constant 0 : index
    %16 = vector.load %arg2[%c0_6, %c0_7] : memref<8x8xf32, #tpu.memory_space<vmem>>, vector<8x8xf32>
    %cst_8 = arith.constant dense<0.000000e+00> : vector<8x8xf32>
    %17 = tpu.matmul %16, %15, %cst_8 {dimension_numbers = #tpu.dot_dimension_numbers<[1], [0], [0], [1], [0, 0, 1, 1], [], []>} : vector<8x8xf32>, vector<8x8xf32>, vector<8x8xf32> -> vector<8x8xf32>
    %c0_9 = arith.constant 0 : index
    %c0_10 = arith.constant 0 : index
    %18 = vector.load %arg5[%c0_9, %c0_10] : memref<1x8xf32, #tpu.memory_space<vmem>>, vector<1x8xf32>
    %19 = vector.broadcast %18 : vector<1x8xf32> to vector<8x8xf32>
    %20 = arith.addf %17, %19 : vector<8x8xf32>
    %cst_11 = arith.constant 0.000000e+00 : f32
    %21 = vector.broadcast %cst_11 : f32 to vector<8x8xf32>
    %22 = arith.maximumf %20, %21 : vector<8x8xf32>
    %c0_12 = arith.constant 0 : index
    %c0_13 = arith.constant 0 : index
    %23 = vector.load %arg4[%c0_12, %c0_13] : memref<8x8xf32, #tpu.memory_space<vmem>>, vector<8x8xf32>
    %24 = arith.mulf %22, %23 : vector<8x8xf32>
    %cst_14 = arith.constant dense<0.000000e+00> : vector<8xf32>
    %25 = vector.multi_reduction <add>, %24, %cst_14 [1] : vector<8x8xf32> to vector<8xf32>
    %26 = vector.shape_cast %25 : vector<8xf32> to vector<8x1xf32>
    %c0_15 = arith.constant 0 : index
    %c0_16 = arith.constant 0 : index
    %27 = vector.load %arg6[%c0_15, %c0_16] : memref<8x1xf32, #tpu.memory_space<vmem>>, vector<8x1xf32>
    %28 = arith.addf %26, %27 : vector<8x1xf32>
    %29 = arith.negf %28 : vector<8x1xf32>
    %30 = math.exp %29 : vector<8x1xf32>
    %cst_17 = arith.constant 1.000000e+00 : f32
    %31 = vector.broadcast %cst_17 : f32 to vector<8x1xf32>
    %32 = arith.addf %31, %30 : vector<8x1xf32>
    %33 = arith.divf %31, %32 : vector<8x1xf32>
    %34 = vector.broadcast %33 : vector<8x1xf32> to vector<8x256xf32>
    %35 = arith.mulf %0, %34 : vector<8x256xf32>
    %c0_18 = arith.constant 0 : index
    %c0_19 = arith.constant 0 : index
    %36 = vector.load %arg7[%c0_18, %c0_19] : memref<8x256xf32, #tpu.memory_space<vmem>>, vector<8x256xf32>
    tpu.vector_store %arg7[%c0_18, %c0_19], %35 {strides = array<i32>} : memref<8x256xf32, #tpu.memory_space<vmem>>, vector<8x256xf32>,
    return
  }
  func.func @transform_0(%arg0: i32) -> (i32, i32) {
    %c0_i32 = arith.constant 0 : i32
    %c0_i32_0 = arith.constant 0 : i32
    return %arg0, %c0_i32 : i32, i32
  }
  func.func @transform_1(%arg0: i32) -> (i32, i32) {
    %c0_i32 = arith.constant 0 : i32
    %c0_i32_0 = arith.constant 0 : i32
    %c0_i32_1 = arith.constant 0 : i32
    return %c0_i32, %c0_i32_0 : i32, i32
  }
  func.func @transform_2(%arg0: i32) -> (i32, i32) {
    %c0_i32 = arith.constant 0 : i32
    %c0_i32_0 = arith.constant 0 : i32
    %c0_i32_1 = arith.constant 0 : i32
    return %c0_i32, %c0_i32_0 : i32, i32
  }
  func.func @transform_3(%arg0: i32) -> (i32, i32) {
    %c0_i32 = arith.constant 0 : i32
    %c0_i32_0 = arith.constant 0 : i32
    %c0_i32_1 = arith.constant 0 : i32
    return %c0_i32, %c0_i32_0 : i32, i32
  }
  func.func @transform_4(%arg0: i32) -> (i32, i32) {
    %c0_i32 = arith.constant 0 : i32
    %c0_i32_0 = arith.constant 0 : i32
    %c0_i32_1 = arith.constant 0 : i32
    return %c0_i32, %c0_i32_0 : i32, i32
  }
  func.func @transform_5(%arg0: i32) -> (i32, i32) {
    %c0_i32 = arith.constant 0 : i32
    %c0_i32_0 = arith.constant 0 : i32
    %c0_i32_1 = arith.constant 0 : i32
    return %c0_i32, %c0_i32_0 : i32, i32
  }
  func.func @transform_6(%arg0: i32) -> (i32, i32) {
    %c0_i32 = arith.constant 0 : i32
    %c0_i32_0 = arith.constant 0 : i32
    return %arg0, %c0_i32 : i32, i32
  }
}

</mosaic_0001>

<bundles_post_ra>
// kernel: tpu_custom_call.1
= control target key start
LH: loop header
LB: loop body
LE: loop exit
PB: predicated region body
PF: predicated region fallthrough
CT: control target
= control target key end

     0   :  { %11 = vsyncpa [#allocation3], 0  ;;  %s319_s0 = inlined_call_operand.hbm [shape: f32[8,256], index: 0, kind: input, shape index: {}, may-alias: {0,6}]   ;;  %s320_s1 = inlined_call_operand.vmem [shape: f32[8,8], index: 1, kind: input, shape index: {}]   ;;  %s321_s2 = inlined_call_operand.vmem [shape: f32[8,8], index: 2, kind: input, shape index: {}]   ;;  %s322_s3 = inlined_call_operand.vmem [shape: f32[8,8], index: 3, kind: input, shape index: {}]   ;;  %s323_s4 = inlined_call_operand.vmem [shape: f32[1,8], index: 4, kind: input, shape index: {}]   ;;  %s324_s5 = inlined_call_operand.vmem [shape: f32[8,1], index: 5, kind: input, shape index: {}]   ;;  %s325_s6 = inlined_call_operand.hbm [shape: f32[8,256], index: 6, kind: output, shape index: {}, may-alias: {0,6}]  }
   0x1   :  { %12 = vsyncpa [#allocation4], 0  ;;  %s240_s21 = smov [#allocation2]   ;;  %s192_s25 = scalar_lea.hbm %s319_s0, 256 }
   0x2   :  { %s19_s22 = sshll.u32 %s240_s21, 4  ;;  %p193_p0 = scmp.ne.s32.totalorder %s319_s0, %s192_s25  ;;  %s20_s22 = int_to_ptr.vmem [resolvable:$true] %s19_s22 }
   0x3   :  { %p196_p1 = scmp.lt.u32.totalorder %s192_s25, %s319_s0 }
   0x5   :  { %p198_p2 = pnand %p196_p1, %p193_p0 }
   0x7   :  { %201 = shalt.err (!%p198_p2)
}
   0x8   :  { %s202_s30 = scalar_lea.vmem %s20_s22, 256  ;;  %p207_p4 = scmp.lt.s32.totalorder %s20_s22, %s20_s22 }
   0x9   :  { %p203_p3 = scmp.ne.s32.totalorder %s20_s22, %s202_s30  ;;  %p208_p5 = scmp.lt.s32.totalorder %s202_s30, %s202_s30 }
   0xb   :  { %p209_p6 = por %p208_p5, %p207_p4 }
   0xd   :  { %p210_p7 = pnand %p209_p6, %p203_p3 }
   0xf   :  { %213 = shalt.err (!%p210_p7)
}
  0x10   :  { %22 = dma.hbm_to_vmem [thread:$0]  %s319_s0, 256, %s20_s22, [#allocation3]  }
  0x11   :  { %236 = dma.done.wait [#allocation3], 256  }
  0x12   :  { %237 = vsyncadd [#allocation3], 4294967040  ;;  %v36_v0 = vld [vmem:[#allocation2] sm:$0xff]  ;;  %v37_v1 = vld [vmem:[#allocation2 + $0x8] sm:$0xff]  ;;  %v241_v3 = vmov 0.0   ;;  %vm242_vm0 = vmmov 0  }
  0x13   :  { %v38_v2 = vadd.f32 %v37_v1, %v36_v0  ;;  %176 = vmatprep.subr.mxu0 %v241_v3  ;;  %178 = vmatprep.mubr.msk.f32.mxu0 %vm242_vm0, %v241_v3  ;;  %v49_v5 = vld [vmem:[%s321_s2] sm:$0xff]  ;;  %vm59_vm1 = vcmask 64512   ;;  %v243_v17 = vmov 0  }
  0x14   :  { %v51_v8 = vld [vmem:[%s320_s1] sm:$0xff]  ;;  %186 = vset.pattern.permute.xlu1 %v243_v17  ;;  %187 = vset.pattern.permute.xlu0 %v243_v17 }
  0x15   :  { %39 = vadd.xlane.f32.xlu0 %v38_v2  ;;  %v171_v9 = vld [vmem:[%s323_s4] ss:$0 sm:$0xff] }
  0x16   :  { %v134_v13 = vld [vmem:[%s322_s3] sm:$0xff]  ;;  %s244_s3 = smov [#allocation5]  }
  0x17   :  { %v139_v18 = vld [vmem:[%s324_s5] sm:$0xff]  ;;  %s162_s4 = sshll.u32 %s244_s3, 4  ;;  %s163_s4 = int_to_ptr.vmem [resolvable:$true] %s162_s4 }
  0x18   :  { %s214_s16 = scalar_lea.vmem %s163_s4, 256  ;;  %p219_p9 = scmp.lt.s32.totalorder %s163_s4, %s163_s4 }
  0x19   :  { %p215_p8 = scmp.ne.s32.totalorder %s163_s4, %s214_s16  ;;  %p220_p10 = scmp.lt.s32.totalorder %s214_s16, %s214_s16 }
  0x1b   :  { %p221_p11 = por %p220_p10, %p219_p9 }
  0x1d   :  { %p222_p12 = pnand %p221_p11, %p215_p8 }
  0xa2   :  { %v40_v4 = vpop.xlane.xlu0 %39 }
  0xa3   :  { %v41_v6 = vmul.f32 0.00390625, %v40_v4 }
  0xa5   :  { %v50_v7 = vmul.f32 %v49_v5, %v41_v6 }
  0xa7   :  { %177 = vmatpush3.msra.mxu0 %v50_v7 }
  0xa8   :  { %179 = vmatmul.mubr.msk.f32.vlgmr.msra.gmra.mrb[0].mxu0 %vm59_vm1, %v51_v8 }
 0x17b   :  { %v129_v10 = vpop.f32.mrb[0].mxu0 }
 0x17c   :  { %v130_v11 = vadd.f32 %v171_v9, %v129_v10  ;;  %v180_v12 = vpop.f32.mrb[1].mxu0 }
 0x17e   :  { %v133_v14 = vmax.f32 %v130_v11, 0.0 }
 0x180   :  { %v135_v15 = vmul.f32 %v134_v13, %v133_v14 }
 0x182   :  { %v136_v16 = vsel %vm59_vm1, %v135_v15, 0.0 }
 0x183   :  { %137 = vadd.xlane.f32.xlu0 %v136_v16 }
 0x210   :  { %v138_v19 = vpop.xlane.xlu0 %137 }
 0x211   :  { %v140_v20 = vadd.f32 %v139_v18, %v138_v19 }
 0x213   :  { %v173_v21 = vmul.f32 -1.442695, %v140_v20 }
 0x215   :  { %188 = vpow2.f32 %v173_v21 }
 0x21f   :  { %v189_v22 = vpop.eup %188 }
 0x220   :  { %v144_v23 = vadd.f32 1.0, %v189_v22 }
 0x222   :  { %190 = vrcp.f32 %v144_v23 }
 0x22c   :  { %v191_v24 = vpop.eup %190 }
 0x22d   :  { %149 = vperm.xlu1 %186, %v191_v24  }
 0x2ac   :  { %v150_v25 = vpop.permute.xlu1 %149 }
 0x2ad   :  { %v152_v26 = vmul.f32 %v150_v25, %v36_v0  ;;  %v153_v27 = vmul.f32 %v150_v25, %v37_v1 }
 0x2af   :  { %154 = vst [vmem:[#allocation5] sm:$0xff] %v152_v26  ;;  %155 = vst [vmem:[#allocation5 + $0x8] sm:$0xff] %v153_v27 }
 0x2b0   :  { %225 = shalt.err (!%p222_p12)
}
 0x2b1   :  { %s226_s18 = scalar_lea.hbm %s325_s6, 256 }
 0x2b2   :  { %p227_p13 = scmp.ne.s32.totalorder %s325_s6, %s226_s18  ;;  %p230_p0 = scmp.lt.u32.totalorder %s226_s18, %s325_s6 }
 0x2b4   :  { %p232_p1 = pnand %p230_p0, %p227_p13 }
 0x2b6   :  { %235 = shalt.err (!%p232_p1)
}
 0x2b7   :  { %165 = dma.vmem_to_hbm [thread:$0]  %s163_s4, 256, %s325_s6, [#allocation4]  }
 0x2b8   :  { %238 = dma.done.wait [#allocation4], 256  }
 0x2b9   :  { %239 = vsyncadd [#allocation4], 4294967040 }
 0x2ba   :  { %169 = vsyncpa [#allocation3], 1 }
 0x2bb   :  { %170 = vsyncpa [#allocation4], 1 }

</bundles_post_ra>
